<compile_context>
chip_gen: v7x
topology: tpu7x:2x2x1
jax: 0.10.0
libtpu: 0.0.40
codegen_flags: <defaults>
</compile_context>

<pallas_src>
import jax
import jax.numpy as jnp
from jax.experimental import pallas as pl
from jax.experimental.pallas import tpu as pltpu


def _round_up(x, m):
    return (x + m - 1) // m * m


def _choose_tm(B, max_tm=1024):
    """Largest row tile (multiple of 16) that keeps the grid even (>= 2) so
    the batch axis still splits across both v7x TensorCores, while cutting
    per-grid-step overhead on single-TC v5e/v6e."""
    B16 = _round_up(B, 16)
    if B16 <= 2 * max_tm:
        tm = _round_up(pl.cdiv(B16, 2), 16)   # grid of 2 fat tiles
    else:
        tm = max_tm
    return max(tm, 16)


def ffn_kernel(x_ref, w1_ref, b1_ref, w2_ref, b2_ref, o_ref):
    # f32 -> bf16 cast in-kernel (avoids a separate pad/cast pass over x).
    x = x_ref[...].astype(jnp.bfloat16)
    # First linear on the MXU (bf16 in / f32 acc) + bias + ReLU in f32 (VPU).
    h = jnp.dot(x, w1_ref[...], preferred_element_type=jnp.float32)
    h = jnp.maximum(h + b1_ref[...], 0.0)                 # (tm, S) + (1, S)
    # Second linear: downcast activations to bf16 for the MXU, f32 acc.
    o = jnp.dot(h.astype(jnp.bfloat16), w2_ref[...],
                preferred_element_type=jnp.float32)
    o = o + b2_ref[...]
    # Dropout: identity (inference mode).
    o_ref[...] = o.astype(o_ref.dtype)


def prepack_ffn_params(w1_t, b1, w2_t, b2):
    """One-time parameter prep (do this at model-load time, NOT per call):
    cast weights to MXU-native bf16 and reshape biases to (1, S) f32."""
    S = w1_t.shape[1]
    return (w1_t.astype(jnp.bfloat16),
            b1.astype(jnp.float32).reshape(1, S),
            w2_t.astype(jnp.bfloat16),
            b2.astype(jnp.float32).reshape(1, S))


def _vmem_limit_bytes(tm, S, out_itemsize):
    # Double-buffered x/out tiles + (double-buffered) resident bf16 weights
    # + f32 intermediates, with a 2x safety margin; floor 32 MiB, capped just
    # below the physical VMEM of the current generation.
    need = 2 * (tm * S * 4 + tm * S * out_itemsize + 2 * S * S * 2 + 2 * S * 4)
    need += tm * S * 8
    try:
        cap = pltpu.get_tpu_info().vmem_capacity_bytes   # 128 MiB v5e/v6e, 64 MiB v7x
    except Exception:
        cap = 64 * 2 ** 20
    cap = min(cap, 128 * 2 ** 20)
    return int(min(max(2 * need, 32 * 2 ** 20), cap - 4 * 2 ** 20))


def ffn_forward(x, packed_params, *, out_dtype=jnp.bfloat16, max_tm=1024):
    """x: (B, S) f32; packed_params from prepack_ffn_params (bf16 weights,
    (1,S) f32 biases, weights stored transposed (in, out) for x @ W)."""
    w1b, b1r, w2b, b2r = packed_params
    B, S = x.shape
    assert w1b.shape == (S, S) and w2b.shape == (S, S)

    tm = _choose_tm(B, max_tm)
    B_pad = _round_up(B, tm)
    if B_pad != B:
        # Rare path (B not a multiple of tm): pad batch rows only.
        x = jnp.pad(x, ((0, B_pad - B), (0, 0)))
    grid = (B_pad // tm,)

    out_itemsize = jnp.dtype(out_dtype).itemsize
    cost = pl.CostEstimate(
        flops=2 * 2 * B_pad * S * S,
        transcendentals=0,
        bytes_accessed=(B_pad * S * 4            # x (f32)
                        + 2 * S * S * 2          # w1, w2 (bf16, resident)
                        + 2 * S * 4              # biases
                        + B_pad * S * out_itemsize),
    )

    out = pl.pallas_call(
        ffn_kernel,
        out_shape=jax.ShapeDtypeStruct((B_pad, S), out_dtype),
        grid_spec=pltpu.PrefetchScalarGridSpec(
            num_scalar_prefetch=0,
            grid=grid,
            in_specs=[
                pl.BlockSpec((tm, S), lambda i: (i, 0)),   # x row tile (f32)
                pl.BlockSpec((S, S), lambda i: (0, 0)),    # w1 resident (bf16)
                pl.BlockSpec((1, S), lambda i: (0, 0)),    # b1
                pl.BlockSpec((S, S), lambda i: (0, 0)),    # w2 resident (bf16)
                pl.BlockSpec((1, S), lambda i: (0, 0)),    # b2
            ],
            out_specs=pl.BlockSpec((tm, S), lambda i: (i, 0)),
        ),
        compiler_params=pltpu.CompilerParams(
            dimension_semantics=("parallel",),             # megacore on v7x
            vmem_limit_bytes=_vmem_limit_bytes(tm, S, out_itemsize),
        ),
        cost_estimate=cost,
    )(x, w1b, b1r, w2b, b2r)

    return out if B_pad == B else out[:B]


def init_linear_params(key, in_features, out_features, dtype=jnp.float32):
    """Deterministic init mimicking nn.Linear: U(-1/sqrt(in), 1/sqrt(in))."""
    kw, kb = jax.random.split(key)
    bound = 1.0 / jnp.sqrt(jnp.array(in_features, dtype))
    # PyTorch weight is (out, in); we store transposed (in, out) for x @ W.
    w_t = jax.random.uniform(kw, (in_features, out_features), dtype,
                             minval=-bound, maxval=bound)
    b = jax.random.uniform(kb, (out_features,), dtype,
                           minval=-bound, maxval=bound)
    return w_t, b


if __name__ == "__main__":
    key = jax.random.PRNGKey(0)
    k_x, k_l1, k_l2 = jax.random.split(key, 3)

    # Module default state_size=200; batch=512 -> two 256-row tiles, so the
    # grid really pipelines and splits across both v7x TensorCores.
    batch, state_size = 512, 200
    x = jax.random.normal(k_x, (batch, state_size), jnp.float32)

    w1_t, b1 = init_linear_params(k_l1, state_size, state_size)
    w2_t, b2 = init_linear_params(k_l2, state_size, state_size)

    # One-time parameter prep (outside the per-call path).
    params = prepack_ffn_params(w1_t, b1, w2_t, b2)
    params = jax.tree_util.tree_map(jax.block_until_ready, params)

    out = ffn_forward(x, params)                 # bf16 output (default)
    out = jax.block_until_ready(out)

    # Reference in plain f32 JAX (dropout = identity in eval mode). The kernel
    # uses bf16 MXU operands + bf16 output, so allow bf16-level tolerance.
    ref = jnp.maximum(x @ w1_t + b1, 0.0) @ w2_t + b2
    assert out.shape == (batch, state_size)
    out_f32 = out.astype(jnp.float32)
    assert jnp.allclose(out_f32, ref, atol=5e-2, rtol=5e-2), \
        float(jnp.max(jnp.abs(out_f32 - ref)))

    print("KERNEL_OK")
</pallas_src>

<mosaic_0001>
module attributes {stable_mosaic.version = 11 : i64} {
  func.func @ffn_kernel(%arg0: i32, %arg1: memref<256x200xf32, #tpu.memory_space<vmem>>, %arg2: memref<200x200xbf16, #tpu.memory_space<vmem>>, %arg3: memref<1x200xf32, #tpu.memory_space<vmem>>, %arg4: memref<200x200xbf16, #tpu.memory_space<vmem>>, %arg5: memref<1x200xf32, #tpu.memory_space<vmem>>, %arg6: memref<256x200xbf16, #tpu.memory_space<vmem>>) attributes {dimension_semantics = [#tpu.dimension_semantics<parallel>], iteration_bounds = array<i64: 2>, scalar_prefetch = 0 : i64, scratch_operands = 0 : i64, tpu.core_type = #tpu.core_type<tc>, window_params = [{transform_indices = @transform_0, window_bounds = array<i64: 256, 200>}, {pipeline_mode = #tpu.pipeline_mode<synchronous>, transform_indices = @transform_1, window_bounds = array<i64: 200, 200>}, {pipeline_mode = #tpu.pipeline_mode<synchronous>, transform_indices = @transform_2, window_bounds = array<i64: 1, 200>}, {pipeline_mode = #tpu.pipeline_mode<synchronous>, transform_indices = @transform_3, window_bounds = array<i64: 200, 200>}, {pipeline_mode = #tpu.pipeline_mode<synchronous>, transform_indices = @transform_4, window_bounds = array<i64: 1, 200>}, {transform_indices = @transform_5, window_bounds = array<i64: 256, 200>}]} {
    %c0 = arith.constant 0 : index
    %c0_0 = arith.constant 0 : index
    %0 = vector.load %arg1[%c0, %c0_0] : memref<256x200xf32, #tpu.memory_space<vmem>>, vector<256x200xf32>
    %1 = arith.truncf %0 : vector<256x200xf32> to vector<256x200xbf16>
    %c0_1 = arith.constant 0 : index
    %c0_2 = arith.constant 0 : index
    %2 = vector.load %arg2[%c0_1, %c0_2] : memref<200x200xbf16, #tpu.memory_space<vmem>>, vector<200x200xbf16>
    %cst = arith.constant dense<0.000000e+00> : vector<256x200xf32>
    %3 = tpu.matmul %1, %2, %cst {dimension_numbers = #tpu.dot_dimension_numbers<[1], [0], [0], [1], [0, 0, 1, 1], [], []>} : vector<256x200xbf16>, vector<200x200xbf16>, vector<256x200xf32> -> vector<256x200xf32>
    %c0_3 = arith.constant 0 : index
    %c0_4 = arith.constant 0 : index
    %4 = vector.load %arg3[%c0_3, %c0_4] : memref<1x200xf32, #tpu.memory_space<vmem>>, vector<1x200xf32>
    %5 = vector.broadcast %4 : vector<1x200xf32> to vector<256x200xf32>
    %6 = arith.addf %3, %5 : vector<256x200xf32>
    %cst_5 = arith.constant 0.000000e+00 : f32
    %7 = vector.broadcast %cst_5 : f32 to vector<256x200xf32>
    %8 = arith.maximumf %6, %7 : vector<256x200xf32>
    %9 = arith.truncf %8 : vector<256x200xf32> to vector<256x200xbf16>
    %c0_6 = arith.constant 0 : index
    %c0_7 = arith.constant 0 : index
    %10 = vector.load %arg4[%c0_6, %c0_7] : memref<200x200xbf16, #tpu.memory_space<vmem>>, vector<200x200xbf16>
    %cst_8 = arith.constant dense<0.000000e+00> : vector<256x200xf32>
    %11 = tpu.matmul %9, %10, %cst_8 {dimension_numbers = #tpu.dot_dimension_numbers<[1], [0], [0], [1], [0, 0, 1, 1], [], []>} : vector<256x200xbf16>, vector<200x200xbf16>, vector<256x200xf32> -> vector<256x200xf32>
    %c0_9 = arith.constant 0 : index
    %c0_10 = arith.constant 0 : index
    %12 = vector.load %arg5[%c0_9, %c0_10] : memref<1x200xf32, #tpu.memory_space<vmem>>, vector<1x200xf32>
    %13 = vector.broadcast %12 : vector<1x200xf32> to vector<256x200xf32>
    %14 = arith.addf %11, %13 : vector<256x200xf32>
    %15 = arith.truncf %14 : vector<256x200xf32> to vector<256x200xbf16>
    %c0_11 = arith.constant 0 : index
    %c0_12 = arith.constant 0 : index
    %16 = vector.load %arg6[%c0_11, %c0_12] : memref<256x200xbf16, #tpu.memory_space<vmem>>, vector<256x200xbf16>
    tpu.vector_store %arg6[%c0_11, %c0_12], %15 {strides = array<i32>} : memref<256x200xbf16, #tpu.memory_space<vmem>>, vector<256x200xbf16>,
    return
  }
  func.func @transform_0(%arg0: i32) -> (i32, i32) {
    %c0_i32 = arith.constant 0 : i32
    %c0_i32_0 = arith.constant 0 : i32
    return %arg0, %c0_i32 : i32, i32
  }
  func.func @transform_1(%arg0: i32) -> (i32, i32) {
    %c0_i32 = arith.constant 0 : i32
    %c0_i32_0 = arith.constant 0 : i32
    %c0_i32_1 = arith.constant 0 : i32
    return %c0_i32, %c0_i32_0 : i32, i32
  }
  func.func @transform_2(%arg0: i32) -> (i32, i32) {
    %c0_i32 = arith.constant 0 : i32
    %c0_i32_0 = arith.constant 0 : i32
    %c0_i32_1 = arith.constant 0 : i32
    return %c0_i32, %c0_i32_0 : i32, i32
  }
  func.func @transform_3(%arg0: i32) -> (i32, i32) {
    %c0_i32 = arith.constant 0 : i32
    %c0_i32_0 = arith.constant 0 : i32
    %c0_i32_1 = arith.constant 0 : i32
    return %c0_i32, %c0_i32_0 : i32, i32
  }
  func.func @transform_4(%arg0: i32) -> (i32, i32) {
    %c0_i32 = arith.constant 0 : i32
    %c0_i32_0 = arith.constant 0 : i32
    %c0_i32_1 = arith.constant 0 : i32
    return %c0_i32, %c0_i32_0 : i32, i32
  }
  func.func @transform_5(%arg0: i32) -> (i32, i32) {
    %c0_i32 = arith.constant 0 : i32
    %c0_i32_0 = arith.constant 0 : i32
    return %arg0, %c0_i32 : i32, i32
  }
}

</mosaic_0001>

<bundles_post_ra>
// kernel: tpu_custom_call.1
= control target key start
LH: loop header
LB: loop body
LE: loop exit
PB: predicated region body
PF: predicated region fallthrough
CT: control target
= control target key end

     0   :  { %s1817_s18 = smov 0   ;;  %s2347_s0 = inlined_call_operand.vmem [shape: f32[512,200], index: 0, kind: input, shape index: {}]   ;;  %s2348_s1 = inlined_call_operand.vmem [shape: bf16[200,200], index: 1, kind: input, shape index: {}]   ;;  %s2349_s2 = inlined_call_operand.vmem [shape: f32[1,200], index: 2, kind: input, shape index: {}]   ;;  %s2350_s3 = inlined_call_operand.vmem [shape: bf16[200,200], index: 3, kind: input, shape index: {}]   ;;  %s2351_s4 = inlined_call_operand.vmem [shape: f32[1,200], index: 4, kind: input, shape index: {}]   ;;  %s2352_s5 = inlined_call_operand.vmem [shape: bf16[512,200], index: 5, kind: output, shape index: {}]  }
   0x1 LB: > { %s1530_s19 = sadd.s32 4294967295, %s1785_s18   ;;  %p1534_p0 = scmp.ge.s32.totalorder %s1785_s18, 1  ;;  %s1785_s18 = sphi %s1817_s18, %s15_s18  }
   0x2   : > { %p189_p1 = scmp.lt.s32.totalorder %s1785_s18, 3 }
   0x4   : > { %p190_p2 = pnand %p1534_p0, %p189_p1 }
   0x5   : > { %v1703_v0 = vld [vmem:[%s2348_s1 + $0x4] ss:$8 sps:$4 sm:$0xff] (!%p190_p2)   ;;  %v1705_v1 = vld [vmem:[%s2348_s1] ss:$8 sps:$4 sm:$0xff] (!%p190_p2)   ;;  %s1535_s24 = sshll.u32 (!%p190_p2), %s1530_s19, 5  ;;  %vm492_vm0 = vcmask (!%p190_p2), 588800  }
   0x6   : > { %193 = sbr.rel (%p190_p2) target bundleno = 620 (0x26c), region = 40  ;;  %548 = vmatprep.subr.bf16.mxu0 (!%p190_p2), %v1703_v0  ;;  %v1706_v2 = vld [vmem:[%s2348_s1 + $0x14] ss:$8 sps:$4 sm:$0xff] (!%p190_p2)   ;;  %p220_p3 = scmp.lt.s32.totalorder (!%p190_p2), %s1535_s24, 63  ;;  %v1708_v3 = vld [vmem:[%s2348_s1 + $0x10] ss:$8 sps:$4 sm:$0xff] (!%p190_p2)  }
   0x7   : > { %549 = vmatpush1.bf16.msra.mxu0 (!%p190_p2), %v1705_v1  ;;  %v1709_v4 = vld [vmem:[%s2348_s1 + $0x24] ss:$8 sps:$4 sm:$0xff] (!%p190_p2)   ;;  %v1711_v5 = vld [vmem:[%s2348_s1 + $0x20] ss:$8 sps:$4 sm:$0xff] (!%p190_p2)   ;;  %v1712_v6 = vld [vmem:[%s2348_s1 + $0x34] ss:$8 sps:$4 sm:$0xff] (!%p190_p2)  }
   0x8   : > { %550 = vmatprep.subr.bf16.mxu0 (!%p190_p2), %v1706_v2  ;;  %v1714_v7 = vld [vmem:[%s2348_s1 + $0x30] ss:$8 sps:$4 sm:$0xff] (!%p190_p2)   ;;  %v1715_v8 = vld [vmem:[%s2348_s1 + $0x44] ss:$8 sps:$4 sm:$0xff] (!%p190_p2)   ;;  %v1717_v9 = vld [vmem:[%s2348_s1 + $0x40] ss:$8 sps:$4 sm:$0xff] (!%p190_p2)  }
   0x9   : > { %v1718_v10 = vld [vmem:[%s2348_s1 + $0x54] ss:$8 sps:$4 sm:$0xff] (!%p190_p2)   ;;  %v1720_v14 = vld [vmem:[%s2348_s1 + $0x50] ss:$8 sps:$4 sm:$0xff] (!%p190_p2)   ;;  %v1721_v15 = vld [vmem:[%s2348_s1 + $0x64] ss:$8 sps:$4 sm:$0xff] (!%p190_p2)  }
   0xa   : > { %v1723_v16 = vld [vmem:[%s2348_s1 + $0x60] ss:$8 sps:$4 sm:$0xff] (!%p190_p2)   ;;  %v1724_v17 = vld [vmem:[%s2348_s1 + $0x74] ss:$8 sps:$4 sm:$0xff] (!%p190_p2)   ;;  %v1726_v18 = vld [vmem:[%s2348_s1 + $0x70] ss:$8 sps:$4 sm:$0xff] (!%p190_p2)  }
   0xb   : > { %551 = vmatpush1.bf16.msra.mxu0 (!%p190_p2), %v1708_v3  ;;  %v1727_v19 = vld [vmem:[%s2348_s1 + $0x84] ss:$8 sps:$4 sm:$0xff] (!%p190_p2)   ;;  %v1729_v20 = vld [vmem:[%s2348_s1 + $0x80] ss:$8 sps:$4 sm:$0xff] (!%p190_p2)   ;;  %v1730_v21 = vld [vmem:[%s2348_s1 + $0x94] ss:$8 sps:$4 sm:$0xff] (!%p190_p2)  }
   0xc   : > { %552 = vmatprep.subr.bf16.mxu0 (!%p190_p2), %v1709_v4  ;;  %v1732_v22 = vld [vmem:[%s2348_s1 + $0x90] ss:$8 sps:$4 sm:$0xff] (!%p190_p2)   ;;  %v1733_v23 = vld [vmem:[%s2348_s1 + $0xa4] ss:$8 sps:$4 sm:$0xff] (!%p190_p2)   ;;  %v1735_v24 = vld [vmem:[%s2348_s1 + $0xa0] ss:$8 sps:$4 sm:$0xff] (!%p190_p2)  }
   0xd   : > { %s2356_s24 = smov (!%p220_p3, %s1535_s24), 63  ;;  %v1736_v25 = vld [vmem:[%s2348_s1 + $0xb4] ss:$8 sps:$4 sm:$0xff]   ;;  %v354_v26 = vld [vmem:[%s2348_s1 + $0xc0] sm:$0xff]  ;;  %v1738_v27 = vld [vmem:[%s2348_s1 + $0xb0] ss:$8 sps:$4 sm:$0xff]  }
   0xe   : > { %s1661_s10 = sshll.u32 %s2356_s24, 4  ;;  %v1566_v28 = vcombine.high %v354_v26, %v354_v26  ;;  %v1565_v29 = vcombine.low %v354_v26, %v354_v26  ;;  %vm541_vm1 = vcmask 1043456   ;;  %v1741_v30 = vld [vmem:[%s2350_s3 + $0x4] ss:$8 sps:$4 sm:$0xff]   ;;  %v1743_v31 = vld [vmem:[%s2350_s3] ss:$8 sps:$4 sm:$0xff]  }
   0xf   : > { %553 = vmatpush1.bf16.msra.mxu0 %v1711_v5  ;;  %s1858_s17 = scalar_lea.vmem %s2347_s0, %s1661_s10  ;;  %v1744_v32 = vld [vmem:[%s2350_s3 + $0x14] ss:$8 sps:$4 sm:$0xff]   ;;  %1053 = vmatprep.subr.bf16.mxu1 %v1741_v30  ;;  %v1746_v38 = vld [vmem:[%s2350_s3 + $0x10] ss:$8 sps:$4 sm:$0xff]   ;;  %v1747_v40 = vld [vmem:[%s2350_s3 + $0x24] ss:$8 sps:$4 sm:$0xff]  }
  0x10   : > { %554 = vmatprep.subr.bf16.mxu0 %v1712_v6  ;;  %v235_v11 = vld [vmem:[%s1858_s17 + $0x8] sm:$0xff]  ;;  %v237_v12 = vld [vmem:[%s1858_s17 + $0x18] sm:$0xff]  ;;  %v234_v33 = vld [vmem:[%s1858_s17] sm:$0xff]  ;;  %v543_v35 = vsel %vm541_vm1, %v1565_v29, 0  ;;  %1054 = vmatpush1.bf16.msra.mxu1 %v1743_v31  ;;  %vm1438_vm2 = vcmask 588804   ;;  %s1662_s14 = sshll.u32 %s2356_s24, 3 }
  0x11   : > { %v299_v13 = vpack.c.bf16 %v237_v12, %v235_v11  ;;  %v236_v34 = vld [vmem:[%s1858_s17 + $0x10] sm:$0xff]  ;;  %v239_v36 = vld [vmem:[%s1858_s17 + $0x28] sm:$0xff]  ;;  %v241_v37 = vld [vmem:[%s1858_s17 + $0x38] sm:$0xff]  ;;  %1055 = vmatprep.subr.bf16.mxu1 %v1744_v32  ;;  %s2184_s19 = scalar_lea.vmem %s2352_s5, %s1662_s14 }
  0x12   : > { %v298_v39 = vpack.c.bf16 %v236_v34, %v234_v33  ;;  %v301_v41 = vpack.c.bf16 %v241_v37, %v239_v36  ;;  %v1749_v42 = vld [vmem:[%s2350_s3 + $0x20] ss:$8 sps:$4 sm:$0xff]   ;;  %v1750_v43 = vld [vmem:[%s2350_s3 + $0x34] ss:$8 sps:$4 sm:$0xff]   ;;  %v1752_v48 = vld [vmem:[%s2350_s3 + $0x30] ss:$8 sps:$4 sm:$0xff]  }
  0x13   : > { %555 = vmatpush1.bf16.msra.mxu0 %v1714_v7  ;;  %1568 = vmatprep.mubr.msk.bf16.mxu0 %vm492_vm0, %v299_v13  ;;  %v238_v44 = vld [vmem:[%s1858_s17 + $0x20] sm:$0xff]  ;;  %v240_v45 = vld [vmem:[%s1858_s17 + $0x30] sm:$0xff]  ;;  %v243_v46 = vld [vmem:[%s1858_s17 + $0x48] sm:$0xff] }
  0x14   : > { %556 = vmatprep.subr.bf16.mxu0 %v1715_v8  ;;  %1056 = vmatpush1.bf16.msra.mxu1 %v1746_v38  ;;  %v245_v47 = vld [vmem:[%s1858_s17 + $0x58] sm:$0xff]  ;;  %v300_v49 = vpack.c.bf16 %v240_v45, %v238_v44  ;;  %v1753_v50 = vld [vmem:[%s2350_s3 + $0x44] ss:$8 sps:$4 sm:$0xff]   ;;  %v1755_v52 = vld [vmem:[%s2350_s3 + $0x40] ss:$8 sps:$4 sm:$0xff]  }
  0x15   : > { %1057 = vmatprep.subr.bf16.mxu1 %v1747_v40  ;;  %v303_v51 = vpack.c.bf16 %v245_v47, %v243_v46  ;;  %v1756_v53 = vld [vmem:[%s2350_s3 + $0x54] ss:$8 sps:$4 sm:$0xff]   ;;  %v242_v54 = vld [vmem:[%s1858_s17 + $0x40] sm:$0xff]  ;;  %v247_v56 = vld [vmem:[%s1858_s17 + $0x68] sm:$0xff] }
  0x16   : > { %v244_v55 = vld [vmem:[%s1858_s17 + $0x50] sm:$0xff]  ;;  %v249_v57 = vld [vmem:[%s1858_s17 + $0x78] sm:$0xff]  ;;  %v1759_v60 = vld [vmem:[%s2350_s3 + $0x64] ss:$8 sps:$4 sm:$0xff]  }
  0x17   : > { %557 = vmatpush1.bf16.msra.mxu0 %v1717_v9  ;;  %v1758_v58 = vld [vmem:[%s2350_s3 + $0x50] ss:$8 sps:$4 sm:$0xff]   ;;  %v302_v59 = vpack.c.bf16 %v244_v55, %v242_v54  ;;  %v305_v61 = vpack.c.bf16 %v249_v57, %v247_v56  ;;  %v1761_v62 = vld [vmem:[%s2350_s3 + $0x60] ss:$8 sps:$4 sm:$0xff]   ;;  %v1762_v63 = vld [vmem:[%s2350_s3 + $0x74] ss:$8 sps:$4 sm:$0xff]  }
  0x18   : > { %558 = vmatprep.subr.bf16.mxu0 %v1718_v10  ;;  %1058 = vmatpush1.bf16.msra.mxu1 %v1749_v42  ;;  %v246_v0 = vld [vmem:[%s1858_s17 + $0x60] sm:$0xff]  ;;  %v248_v1 = vld [vmem:[%s1858_s17 + $0x70] sm:$0xff]  ;;  %v251_v2 = vld [vmem:[%s1858_s17 + $0x88] sm:$0xff] }
  0x19   : > { %1059 = vmatprep.subr.bf16.mxu1 %v1750_v43  ;;  %v253_v3 = vld [vmem:[%s1858_s17 + $0x98] sm:$0xff]  ;;  %v304_v5 = vpack.c.bf16 %v248_v1, %v246_v0  ;;  %v1765_v6 = vld [vmem:[%s2350_s3 + $0x84] ss:$8 sps:$4 sm:$0xff]   ;;  %v1767_v8 = vld [vmem:[%s2350_s3 + $0x80] ss:$8 sps:$4 sm:$0xff]  }
  0x1a   : > { %v1764_v4 = vld [vmem:[%s2350_s3 + $0x70] ss:$8 sps:$4 sm:$0xff]   ;;  %v307_v7 = vpack.c.bf16 %v253_v3, %v251_v2  ;;  %v1768_v9 = vld [vmem:[%s2350_s3 + $0x94] ss:$8 sps:$4 sm:$0xff]   ;;  %v250_v10 = vld [vmem:[%s1858_s17 + $0x80] sm:$0xff] }
  0x1b   : > { %559 = vmatpush1.bf16.msra.mxu0 %v1720_v14  ;;  %v252_v11 = vld [vmem:[%s1858_s17 + $0x90] sm:$0xff]  ;;  %v255_v12 = vld [vmem:[%s1858_s17 + $0xa8] sm:$0xff]  ;;  %v257_v13 = vld [vmem:[%s1858_s17 + $0xb8] sm:$0xff] }
  0x1c   : > { %560 = vmatprep.subr.bf16.mxu0 %v1721_v15  ;;  %1060 = vmatpush1.bf16.msra.mxu1 %v1752_v48  ;;  %v1770_v14 = vld [vmem:[%s2350_s3 + $0x90] ss:$8 sps:$4 sm:$0xff]   ;;  %v306_v15 = vpack.c.bf16 %v252_v11, %v250_v10  ;;  %v263_v26 = vld [vmem:[%s1858_s17 + $0xe8] sm:$0xff]  ;;  %v262_v30 = vld [vmem:[%s1858_s17 + $0xe0] sm:$0xff] }
  0x1d   : > { %1061 = vmatprep.subr.bf16.mxu1 %v1753_v50  ;;  %v264_v31 = vld [vmem:[%s1858_s17 + $0xf0] sm:$0xff]  ;;  %v267_v32 = vld [vmem:[%s1858_s17 + $0x108] sm:$0xff]  ;;  %v269_v33 = vld [vmem:[%s1858_s17 + $0x118] sm:$0xff] }
  0x1e   : > { %v312_v34 = vpack.c.bf16 %v264_v31, %v262_v30  ;;  %v266_v36 = vld [vmem:[%s1858_s17 + $0x100] sm:$0xff]  ;;  %v268_v37 = vld [vmem:[%s1858_s17 + $0x110] sm:$0xff]  ;;  %v271_v38 = vld [vmem:[%s1858_s17 + $0x128] sm:$0xff] }
  0x1f   : > { %561 = vmatpush1.bf16.msra.mxu0 %v1723_v16  ;;  %v1771_v16 = vld [vmem:[%s2350_s3 + $0xa4] ss:$8 sps:$4 sm:$0xff]   ;;  %v314_v40 = vpack.c.bf16 %v268_v37, %v266_v36  ;;  %v272_v43 = vld [vmem:[%s1858_s17 + $0x130] sm:$0xff]  ;;  %v277_v45 = vld [vmem:[%s1858_s17 + $0x158] sm:$0xff] }
  0x20   : > { %562 = vmatprep.subr.bf16.mxu0 %v1724_v17  ;;  %1062 = vmatpush1.bf16.msra.mxu1 %v1755_v52  ;;  %v309_v17 = vpack.c.bf16 %v257_v13, %v255_v12  ;;  %v270_v42 = vld [vmem:[%s1858_s17 + $0x120] sm:$0xff]  ;;  %v275_v44 = vld [vmem:[%s1858_s17 + $0x148] sm:$0xff]  ;;  %v280_v55 = vld [vmem:[%s1858_s17 + $0x170] sm:$0xff] }
  0x21   : > { %1063 = vmatprep.subr.bf16.mxu1 %v1756_v53  ;;  %v316_v46 = vpack.c.bf16 %v272_v43, %v270_v42  ;;  %v319_v47 = vpack.c.bf16 %v277_v45, %v275_v44  ;;  %v274_v48 = vld [vmem:[%s1858_s17 + $0x140] sm:$0xff]  ;;  %v279_v50 = vld [vmem:[%s1858_s17 + $0x168] sm:$0xff]  ;;  %v284_v3 = vld [vmem:[%s1858_s17 + $0x190] sm:$0xff] }
  0x22   : > { %v278_v54 = vld [vmem:[%s1858_s17 + $0x160] sm:$0xff]  ;;  %v283_v57 = vld [vmem:[%s1858_s17 + $0x188] sm:$0xff]  ;;  %v288_v10 = vld [vmem:[%s1858_s17 + $0x1b0] sm:$0xff] }
  0x23   : > { %563 = vmatpush1.bf16.msra.mxu0 %v1726_v18  ;;  %v254_v18 = vld [vmem:[%s1858_s17 + $0xa0] sm:$0xff]  ;;  %v291_v11 = vld [vmem:[%s1858_s17 + $0x1c8] sm:$0xff]  ;;  %v293_v12 = vld [vmem:[%s1858_s17 + $0x1d8] sm:$0xff] }
  0x24   : > { %564 = vmatprep.subr.bf16.mxu0 %v1727_v19  ;;  %1064 = vmatpush1.bf16.msra.mxu1 %v1758_v58  ;;  %v256_v19 = vld [vmem:[%s1858_s17 + $0xb0] sm:$0xff]  ;;  %v1773_v56 = vld [vmem:[%s2350_s3 + $0xa0] ss:$8 sps:$4 sm:$0xff]   ;;  %v285_v58 = vld [vmem:[%s1858_s17 + $0x198] sm:$0xff] }
  0x25   : > { %1065 = vmatprep.subr.bf16.mxu1 %v1759_v60  ;;  %v1774_v60 = vld [vmem:[%s2350_s3 + $0xb4] ss:$8 sps:$4 sm:$0xff]   ;;  %v282_v2 = vld [vmem:[%s1858_s17 + $0x180] sm:$0xff]  ;;  %vm2177_vm3 = vmor %vm1438_vm2, %vm541_vm1 }
  0x27   : > { %565 = vmatpush1.bf16.msra.mxu0 %v1729_v20  ;;  %v259_v20 = vld [vmem:[%s1858_s17 + $0xc8] sm:$0xff] }
  0x28   : > { %566 = vmatprep.subr.bf16.mxu0 %v1730_v21  ;;  %1066 = vmatpush1.bf16.msra.mxu1 %v1761_v62  ;;  %v261_v21 = vld [vmem:[%s1858_s17 + $0xd8] sm:$0xff] }
  0x29   : > { %1067 = vmatprep.subr.bf16.mxu1 %v1762_v63  ;;  %v1776_v62 = vld [vmem:[%s2350_s3 + $0xb0] ss:$8 sps:$4 sm:$0xff]   ;;  %v861_v63 = vld [vmem:[%s2350_s3 + $0xc0] sm:$0xff] }
  0x2a   : > { %v1609_v0 = vcombine.high %v861_v63, %v861_v63  ;;  %v1608_v1 = vcombine.low %v861_v63, %v861_v63 }
  0x2b   : > { %567 = vmatpush1.bf16.msra.mxu0 %v1732_v22  ;;  %v308_v22 = vpack.c.bf16 %v256_v19, %v254_v18  ;;  %v297_v18 = vld [vmem:[%s1858_s17 + $0x1f8] sm:$0xff] }
  0x2c   : > { %568 = vmatprep.subr.bf16.mxu0 %v1733_v23  ;;  %1068 = vmatpush1.bf16.msra.mxu1 %v1764_v4  ;;  %v311_v23 = vpack.c.bf16 %v261_v21, %v259_v20  ;;  %v287_v4 = vld [vmem:[%s1858_s17 + $0x1a8] sm:$0xff]  ;;  %v294_v21 = vld [vmem:[%s1858_s17 + $0x1e0] sm:$0xff] }
  0x2d   : > { %1069 = vmatprep.subr.bf16.mxu1 %v1765_v6  ;;  %v1048_v6 = vsel %vm541_vm1, %v1608_v1, 0 }
  0x2f   : > { %569 = vmatpush1.bf16.msra.mxu0 %v1735_v24  ;;  %v258_v24 = vld [vmem:[%s1858_s17 + $0xc0] sm:$0xff] }
  0x30   : > { %570 = vmatprep.subr.bf16.mxu0 %v1736_v25  ;;  %1070 = vmatpush1.bf16.msra.mxu1 %v1767_v8  ;;  %v260_v25 = vld [vmem:[%s1858_s17 + $0xd0] sm:$0xff] }
  0x31   : > { %1071 = vmatprep.subr.bf16.mxu1 %v1768_v9  ;;  %v286_v9 = vld [vmem:[%s1858_s17 + $0x1a0] sm:$0xff] }
  0x32   : > { %v324_v13 = vpack.c.bf16 %v288_v10, %v286_v9 }
  0x33   : > { %571 = vmatpush1.bf16.msra.mxu0 %v1738_v27  ;;  %v265_v27 = vld [vmem:[%s1858_s17 + $0xf8] sm:$0xff] }
  0x34   : > { %1567 = vmatprep.subr.msk.bf16.mxu0 %vm541_vm1, %v1566_v28  ;;  %1072 = vmatpush1.bf16.msra.mxu1 %v1770_v14  ;;  %v310_v28 = vpack.c.bf16 %v260_v25, %v258_v24  ;;  %v313_v29 = vpack.c.bf16 %v265_v27, %v263_v26  ;;  %v327_v14 = vpack.c.bf16 %v293_v12, %v291_v11  ;;  %v357_v24 = vlaneseq  ;;  %v355_v27 = vld [vmem:[%s2349_s2] sm:$0x3] }
  0x35   : > { %1073 = vmatprep.subr.bf16.mxu1 %v1771_v16  ;;  %v292_v16 = vld [vmem:[%s1858_s17 + $0x1d0] sm:$0xff] }
  0x36   : > { %v2067_v25 = vshrl.u32 %v357_v24, 7 }
  0x37   : > { %573 = vmatpush1.bf16.msra.mxu0 %v543_v35  ;;  %v315_v35 = vpack.c.bf16 %v269_v33, %v267_v32 }
  0x38   : > { %1074 = vmatpush1.bf16.msra.mxu1 %v1773_v56  ;;  %v359_v26 = vsub.s32 0, %v2067_v25 }
  0x39   : > { %1075 = vmatprep.subr.bf16.mxu1 %v1774_v60 }
  0x3a   : > { %581 = vmatmul.mubr.bf16.vlgmr.msra.gmra.mrb[0].mxu0 %v298_v39  ;;  %v273_v39 = vld [vmem:[%s1858_s17 + $0x138] sm:$0xff] }
  0x3b   : > { %1569 = vmatprep.mubr.msk.bf16.mxu0 %vm492_vm0, %v301_v41  ;;  %v317_v41 = vpack.c.bf16 %v273_v39, %v271_v38 }
  0x3c   : > { %1076 = vmatpush1.bf16.msra.mxu1 %v1776_v62 }
  0x3d   : > { %1610 = vmatprep.subr.msk.bf16.mxu1 %vm541_vm1, %v1609_v0 }
  0x40   : > { %1078 = vmatpush1.bf16.msra.mxu1 %v1048_v6 }
  0x42   : > { %591 = vmatmul.mubr.bf16.gmra.mrb[4].mxu0 %v300_v49  ;;  %v276_v49 = vld [vmem:[%s1858_s17 + $0x150] sm:$0xff] }
  0x43   : > { %1570 = vmatprep.mubr.msk.bf16.mxu0 %vm492_vm0, %v303_v51  ;;  %v281_v51 = vld [vmem:[%s1858_s17 + $0x178] sm:$0xff]  ;;  %v318_v52 = vpack.c.bf16 %v276_v49, %v274_v48 }
  0x44   : > { %v321_v53 = vpack.c.bf16 %v281_v51, %v279_v50 }
  0x4a   : > { %601 = vmatmul.mubr.bf16.gmra.mrb[8].mxu0 %v302_v59  ;;  %v320_v59 = vpack.c.bf16 %v280_v55, %v278_v54 }
  0x4b   : > { %1571 = vmatprep.mubr.msk.bf16.mxu0 %vm492_vm0, %v305_v61  ;;  %v323_v61 = vpack.c.bf16 %v285_v58, %v283_v57 }
  0x52   : > { %611 = vmatmul.mubr.bf16.gmra.mrb[12].mxu0 %v304_v5  ;;  %v289_v5 = vld [vmem:[%s1858_s17 + $0x1b8] sm:$0xff] }
  0x53   : > { %1572 = vmatprep.mubr.msk.bf16.mxu0 %vm492_vm0, %v307_v7  ;;  %v322_v7 = vpack.c.bf16 %v284_v3, %v282_v2  ;;  %v325_v8 = vpack.c.bf16 %v289_v5, %v287_v4 }
  0x5a   : > { %621 = vmatmul.mubr.bf16.gmra.mrb[16].mxu0 %v306_v15  ;;  %v290_v15 = vld [vmem:[%s1858_s17 + $0x1c0] sm:$0xff] }
  0x5b   : > { %1573 = vmatprep.mubr.msk.bf16.mxu0 %vm492_vm0, %v309_v17  ;;  %v295_v17 = vld [vmem:[%s1858_s17 + $0x1e8] sm:$0xff]  ;;  %v326_v19 = vpack.c.bf16 %v292_v16, %v290_v15 }
  0x5c   : > { %v329_v20 = vpack.c.bf16 %v297_v18, %v295_v17 }
  0x62   : > { %631 = vmatmul.mubr.bf16.gmra.mrb[20].mxu0 %v308_v22  ;;  %v296_v22 = vld [vmem:[%s1858_s17 + $0x1f0] sm:$0xff] }
  0x63   : > { %1574 = vmatprep.mubr.msk.bf16.mxu0 %vm492_vm0, %v311_v23  ;;  %v328_v23 = vpack.c.bf16 %v296_v22, %v294_v21 }
  0x6a   : > { %641 = vmatmul.mubr.bf16.gmra.mrb[24].mxu0 %v310_v28  ;;  %v363_v28 = vsub.s32 1, %v2067_v25 }
  0x6b   : > { %1575 = vmatprep.mubr.msk.bf16.mxu0 %vm492_vm0, %v313_v29  ;;  %v2076_v29 = vrot.slane %v355_v27, %v359_v26 }
  0x6c   : > { %v2080_v30 = vrot.slane %v355_v27, %v363_v28 }
  0x72   : > { %651 = vmatmul.mubr.bf16.gmra.mrb[28].mxu0 %v312_v34 }
  0x73   : > { %1576 = vmatprep.mubr.msk.bf16.mxu0 %vm492_vm0, %v315_v35 }
  0x7a   : > { %661 = vmatmul.mubr.bf16.gmra.mrb[32].mxu0 %v314_v40 }
  0x7b   : > { %1577 = vmatprep.mubr.msk.bf16.mxu0 %vm492_vm0, %v317_v41 }
  0x82   : > { %671 = vmatmul.mubr.bf16.gmra.mrb[36].mxu0 %v316_v46 }
  0x83   : > { %1578 = vmatprep.mubr.msk.bf16.mxu0 %vm492_vm0, %v319_v47 }
  0x8a   : > { %681 = vmatmul.mubr.bf16.gmra.mrb[40].mxu0 %v318_v52 }
  0x8b   : > { %1579 = vmatprep.mubr.msk.bf16.mxu0 %vm492_vm0, %v321_v53 }
  0x92   : > { %691 = vmatmul.mubr.bf16.gmra.mrb[44].mxu0 %v320_v59 }
  0x93   : > { %1580 = vmatprep.mubr.msk.bf16.mxu0 %vm492_vm0, %v323_v61 }
  0x9a   : > { %701 = vmatmul.mubr.bf16.gmra.mrb[48].mxu0 %v322_v7 }
  0x9b   : > { %1581 = vmatprep.mubr.msk.bf16.mxu0 %vm492_vm0, %v325_v8 }
  0xa2   : > { %711 = vmatmul.mubr.bf16.gmra.mrb[52].mxu0 %v324_v13 }
  0xa3   : > { %1582 = vmatprep.mubr.msk.bf16.mxu0 %vm492_vm0, %v327_v14 }
  0xaa   : > { %721 = vmatmul.mubr.bf16.gmra.mrb[56].mxu0 %v326_v19 }
  0xab   : > { %1583 = vmatprep.mubr.msk.bf16.mxu0 %vm492_vm0, %v329_v20 }
  0xb2   : > { %731 = vmatmul.mubr.bf16.gmra.mrb[60].mxu0 %v328_v23 }
 0x10d   : > { %v582_v31 = vpop.f32.mrb[0].mxu0 }
 0x10e   : > { %v583_v32 = vadd.f32 %v582_v31, %v2076_v29  ;;  %v584_v33 = vpop.f32.mrb[1].mxu0 }
 0x10f   : > { %v585_v34 = vadd.f32 %v584_v33, %v2080_v30  ;;  %v586_v35 = vpop.f32.mrb[2].mxu0 }
 0x110   : > { %v587_v36 = vadd.f32 %v586_v35, %v2076_v29  ;;  %v588_v37 = vpop.f32.mrb[3].mxu0  ;;  %v741_v39 = vmax.f32 %v583_v32, 0.0 }
 0x111   : > { %v589_v38 = vadd.f32 %v588_v37, %v2080_v30  ;;  %v742_v41 = vmax.f32 %v585_v34, 0.0 }
 0x112   : > { %v743_v40 = vmax.f32 %v587_v36, 0.0 }
 0x113   : > { %v744_v42 = vmax.f32 %v589_v38, 0.0 }
 0x114   : > { %v805_v43 = vpack.c.bf16 %v743_v40, %v741_v39 }
 0x115   : > { %v592_v44 = vpop.f32.mrb[4].mxu0  ;;  %v806_v45 = vpack.c.bf16 %v744_v42, %v742_v41 }
 0x116   : > { %v593_v46 = vadd.f32 %v592_v44, %v2076_v29  ;;  %v594_v47 = vpop.f32.mrb[5].mxu0 }
 0x117   : > { %v595_v48 = vadd.f32 %v594_v47, %v2080_v30  ;;  %v596_v49 = vpop.f32.mrb[6].mxu0  ;;  %1611 = vmatprep.mubr.msk.bf16.mxu1 %vm492_vm0, %v806_v45 }
 0x118   : > { %v597_v50 = vadd.f32 %v596_v49, %v2076_v29  ;;  %v598_v51 = vpop.f32.mrb[7].mxu0  ;;  %1086 = vmatmul.mubr.bf16.vlgmr.msra.gmra.mrb[0].mxu1 %v805_v43  ;;  %v745_v53 = vmax.f32 %v593_v46, 0.0 }
 0x119   : > { %v599_v52 = vadd.f32 %v598_v51, %v2080_v30  ;;  %v746_v55 = vmax.f32 %v595_v48, 0.0 }
 0x11a   : > { %v747_v54 = vmax.f32 %v597_v50, 0.0 }
 0x11b   : > { %v748_v56 = vmax.f32 %v599_v52, 0.0 }
 0x11c   : > { %v807_v57 = vpack.c.bf16 %v747_v54, %v745_v53 }
 0x11d   : > { %v808_v58 = vpack.c.bf16 %v748_v56, %v746_v55  ;;  %v602_v59 = vpop.f32.mrb[8].mxu0 }
 0x11e   : > { %v603_v60 = vadd.f32 %v602_v59, %v2076_v29  ;;  %v604_v61 = vpop.f32.mrb[9].mxu0 }
 0x11f   : > { %v605_v62 = vadd.f32 %v604_v61, %v2080_v30  ;;  %v606_v63 = vpop.f32.mrb[10].mxu0  ;;  %1612 = vmatprep.mubr.msk.bf16.mxu1 %vm492_vm0, %v808_v58 }
 0x120   : > { %v607_v0 = vadd.f32 %v606_v63, %v2076_v29  ;;  %v608_v1 = vpop.f32.mrb[11].mxu0  ;;  %1096 = vmatmul.mubr.bf16.gmra.mrb[4].mxu1 %v807_v57  ;;  %v749_v3 = vmax.f32 %v603_v60, 0.0 }
 0x121   : > { %v609_v2 = vadd.f32 %v608_v1, %v2080_v30  ;;  %v750_v5 = vmax.f32 %v605_v62, 0.0 }
 0x122   : > { %v751_v4 = vmax.f32 %v607_v0, 0.0 }
 0x123   : > { %v752_v6 = vmax.f32 %v609_v2, 0.0 }
 0x124   : > { %v809_v7 = vpack.c.bf16 %v751_v4, %v749_v3 }
 0x125   : > { %v810_v8 = vpack.c.bf16 %v752_v6, %v750_v5  ;;  %v612_v9 = vpop.f32.mrb[12].mxu0 }
 0x126   : > { %v613_v10 = vadd.f32 %v612_v9, %v2076_v29  ;;  %v614_v11 = vpop.f32.mrb[13].mxu0 }
 0x127   : > { %v615_v12 = vadd.f32 %v614_v11, %v2080_v30  ;;  %v616_v13 = vpop.f32.mrb[14].mxu0  ;;  %1613 = vmatprep.mubr.msk.bf16.mxu1 %vm492_vm0, %v810_v8 }
 0x128   : > { %v617_v14 = vadd.f32 %v616_v13, %v2076_v29  ;;  %v618_v15 = vpop.f32.mrb[15].mxu0  ;;  %1106 = vmatmul.mubr.bf16.gmra.mrb[8].mxu1 %v809_v7  ;;  %v753_v17 = vmax.f32 %v613_v10, 0.0 }
 0x129   : > { %v619_v16 = vadd.f32 %v618_v15, %v2080_v30  ;;  %v754_v19 = vmax.f32 %v615_v12, 0.0 }
 0x12a   : > { %v755_v18 = vmax.f32 %v617_v14, 0.0 }
 0x12b   : > { %v756_v20 = vmax.f32 %v619_v16, 0.0 }
 0x12c   : > { %v811_v21 = vpack.c.bf16 %v755_v18, %v753_v17 }
 0x12d   : > { %v812_v22 = vpack.c.bf16 %v756_v20, %v754_v19  ;;  %v622_v23 = vpop.f32.mrb[16].mxu0 }
 0x12e   : > { %v623_v24 = vadd.f32 %v622_v23, %v2076_v29  ;;  %v624_v27 = vpop.f32.mrb[17].mxu0 }
 0x12f   : > { %v625_v31 = vadd.f32 %v624_v27, %v2080_v30  ;;  %v626_v32 = vpop.f32.mrb[18].mxu0  ;;  %1614 = vmatprep.mubr.msk.bf16.mxu1 %vm492_vm0, %v812_v22 }
 0x130   : > { %v627_v33 = vadd.f32 %v626_v32, %v2076_v29  ;;  %v628_v34 = vpop.f32.mrb[19].mxu0  ;;  %1116 = vmatmul.mubr.bf16.gmra.mrb[12].mxu1 %v811_v21  ;;  %v757_v36 = vmax.f32 %v623_v24, 0.0 }
 0x131   : > { %v629_v35 = vadd.f32 %v628_v34, %v2080_v30  ;;  %v758_v38 = vmax.f32 %v625_v31, 0.0 }
 0x132   : > { %v759_v37 = vmax.f32 %v627_v33, 0.0 }
 0x133   : > { %v760_v39 = vmax.f32 %v629_v35, 0.0 }
 0x134   : > { %v813_v40 = vpack.c.bf16 %v759_v37, %v757_v36 }
 0x135   : > { %v814_v41 = vpack.c.bf16 %v760_v39, %v758_v38  ;;  %v632_v42 = vpop.f32.mrb[20].mxu0 }
 0x136   : > { %v633_v43 = vadd.f32 %v632_v42, %v2076_v29  ;;  %v634_v44 = vpop.f32.mrb[21].mxu0 }
 0x137   : > { %v635_v45 = vadd.f32 %v634_v44, %v2080_v30  ;;  %v636_v46 = vpop.f32.mrb[22].mxu0  ;;  %1615 = vmatprep.mubr.msk.bf16.mxu1 %vm492_vm0, %v814_v41 }
 0x138   : > { %v637_v47 = vadd.f32 %v636_v46, %v2076_v29  ;;  %v638_v48 = vpop.f32.mrb[23].mxu0  ;;  %1126 = vmatmul.mubr.bf16.gmra.mrb[16].mxu1 %v813_v40  ;;  %v761_v50 = vmax.f32 %v633_v43, 0.0 }
 0x139   : > { %v639_v49 = vadd.f32 %v638_v48, %v2080_v30  ;;  %v762_v52 = vmax.f32 %v635_v45, 0.0 }
 0x13a   : > { %v763_v51 = vmax.f32 %v637_v47, 0.0 }
 0x13b   : > { %v764_v53 = vmax.f32 %v639_v49, 0.0 }
 0x13c   : > { %v815_v54 = vpack.c.bf16 %v763_v51, %v761_v50 }
 0x13d   : > { %v816_v55 = vpack.c.bf16 %v764_v53, %v762_v52  ;;  %v642_v56 = vpop.f32.mrb[24].mxu0 }
 0x13e   : > { %v643_v57 = vadd.f32 %v642_v56, %v2076_v29  ;;  %v644_v58 = vpop.f32.mrb[25].mxu0 }
 0x13f   : > { %v645_v59 = vadd.f32 %v644_v58, %v2080_v30  ;;  %v646_v60 = vpop.f32.mrb[26].mxu0  ;;  %1616 = vmatprep.mubr.msk.bf16.mxu1 %vm492_vm0, %v816_v55 }
 0x140   : > { %v647_v61 = vadd.f32 %v646_v60, %v2076_v29  ;;  %v648_v62 = vpop.f32.mrb[27].mxu0  ;;  %1136 = vmatmul.mubr.bf16.gmra.mrb[20].mxu1 %v815_v54  ;;  %v765_v0 = vmax.f32 %v643_v57, 0.0 }
 0x141   : > { %v649_v63 = vadd.f32 %v648_v62, %v2080_v30  ;;  %v766_v2 = vmax.f32 %v645_v59, 0.0 }
 0x142   : > { %v767_v1 = vmax.f32 %v647_v61, 0.0 }
 0x143   : > { %v768_v3 = vmax.f32 %v649_v63, 0.0 }
 0x144   : > { %v817_v4 = vpack.c.bf16 %v767_v1, %v765_v0 }
 0x145   : > { %v818_v5 = vpack.c.bf16 %v768_v3, %v766_v2  ;;  %v652_v6 = vpop.f32.mrb[28].mxu0 }
 0x146   : > { %v653_v7 = vadd.f32 %v652_v6, %v2076_v29  ;;  %v654_v8 = vpop.f32.mrb[29].mxu0 }
 0x147   : > { %v655_v9 = vadd.f32 %v654_v8, %v2080_v30  ;;  %v656_v10 = vpop.f32.mrb[30].mxu0  ;;  %1617 = vmatprep.mubr.msk.bf16.mxu1 %vm492_vm0, %v818_v5 }
 0x148   : > { %v657_v11 = vadd.f32 %v656_v10, %v2076_v29  ;;  %v658_v12 = vpop.f32.mrb[31].mxu0  ;;  %1146 = vmatmul.mubr.bf16.gmra.mrb[24].mxu1 %v817_v4  ;;  %v769_v14 = vmax.f32 %v653_v7, 0.0 }
 0x149   : > { %v659_v13 = vadd.f32 %v658_v12, %v2080_v30  ;;  %v770_v16 = vmax.f32 %v655_v9, 0.0 }
 0x14a   : > { %v771_v15 = vmax.f32 %v657_v11, 0.0 }
 0x14b   : > { %v772_v17 = vmax.f32 %v659_v13, 0.0 }
 0x14c   : > { %v819_v18 = vpack.c.bf16 %v771_v15, %v769_v14 }
 0x14d   : > { %v820_v19 = vpack.c.bf16 %v772_v17, %v770_v16  ;;  %v662_v20 = vpop.f32.mrb[32].mxu0 }
 0x14e   : > { %v663_v21 = vadd.f32 %v662_v20, %v2076_v29  ;;  %v664_v22 = vpop.f32.mrb[33].mxu0 }
 0x14f   : > { %v665_v23 = vadd.f32 %v664_v22, %v2080_v30  ;;  %v666_v24 = vpop.f32.mrb[34].mxu0  ;;  %1618 = vmatprep.mubr.msk.bf16.mxu1 %vm492_vm0, %v820_v19 }
 0x150   : > { %v667_v27 = vadd.f32 %v666_v24, %v2076_v29  ;;  %v668_v31 = vpop.f32.mrb[35].mxu0  ;;  %1156 = vmatmul.mubr.bf16.gmra.mrb[28].mxu1 %v819_v18  ;;  %v773_v33 = vmax.f32 %v663_v21, 0.0 }
 0x151   : > { %v669_v32 = vadd.f32 %v668_v31, %v2080_v30  ;;  %v774_v35 = vmax.f32 %v665_v23, 0.0 }
 0x152   : > { %v775_v34 = vmax.f32 %v667_v27, 0.0 }
 0x153   : > { %v776_v36 = vmax.f32 %v669_v32, 0.0 }
 0x154   : > { %v821_v37 = vpack.c.bf16 %v775_v34, %v773_v33 }
 0x155   : > { %v822_v38 = vpack.c.bf16 %v776_v36, %v774_v35  ;;  %v672_v39 = vpop.f32.mrb[36].mxu0 }
 0x156   : > { %v673_v40 = vadd.f32 %v672_v39, %v2076_v29  ;;  %v674_v41 = vpop.f32.mrb[37].mxu0 }
 0x157   : > { %v675_v42 = vadd.f32 %v674_v41, %v2080_v30  ;;  %v676_v43 = vpop.f32.mrb[38].mxu0  ;;  %1619 = vmatprep.mubr.msk.bf16.mxu1 %vm492_vm0, %v822_v38 }
 0x158   : > { %v677_v44 = vadd.f32 %v676_v43, %v2076_v29  ;;  %v678_v45 = vpop.f32.mrb[39].mxu0  ;;  %1166 = vmatmul.mubr.bf16.gmra.mrb[32].mxu1 %v821_v37  ;;  %v777_v47 = vmax.f32 %v673_v40, 0.0 }
 0x159   : > { %v679_v46 = vadd.f32 %v678_v45, %v2080_v30  ;;  %v778_v49 = vmax.f32 %v675_v42, 0.0 }
 0x15a   : > { %v779_v48 = vmax.f32 %v677_v44, 0.0 }
 0x15b   : > { %v780_v50 = vmax.f32 %v679_v46, 0.0 }
 0x15c   : > { %v823_v51 = vpack.c.bf16 %v779_v48, %v777_v47 }
 0x15d   : > { %v824_v52 = vpack.c.bf16 %v780_v50, %v778_v49  ;;  %v682_v53 = vpop.f32.mrb[40].mxu0 }
 0x15e   : > { %v683_v54 = vadd.f32 %v682_v53, %v2076_v29  ;;  %v684_v55 = vpop.f32.mrb[41].mxu0 }
 0x15f   : > { %v685_v56 = vadd.f32 %v684_v55, %v2080_v30  ;;  %v686_v57 = vpop.f32.mrb[42].mxu0  ;;  %1620 = vmatprep.mubr.msk.bf16.mxu1 %vm492_vm0, %v824_v52 }
 0x160   : > { %v687_v58 = vadd.f32 %v686_v57, %v2076_v29  ;;  %v688_v59 = vpop.f32.mrb[43].mxu0  ;;  %1176 = vmatmul.mubr.bf16.gmra.mrb[36].mxu1 %v823_v51  ;;  %v781_v61 = vmax.f32 %v683_v54, 0.0 }
 0x161   : > { %v689_v60 = vadd.f32 %v688_v59, %v2080_v30  ;;  %v782_v63 = vmax.f32 %v685_v56, 0.0 }
 0x162   : > { %v783_v62 = vmax.f32 %v687_v58, 0.0 }
 0x163   : > { %v784_v0 = vmax.f32 %v689_v60, 0.0 }
 0x164   : > { %v825_v1 = vpack.c.bf16 %v783_v62, %v781_v61 }
 0x165   : > { %v826_v2 = vpack.c.bf16 %v784_v0, %v782_v63  ;;  %v692_v3 = vpop.f32.mrb[44].mxu0 }
 0x166   : > { %v693_v4 = vadd.f32 %v692_v3, %v2076_v29  ;;  %v694_v5 = vpop.f32.mrb[45].mxu0 }
 0x167   : > { %v695_v6 = vadd.f32 %v694_v5, %v2080_v30  ;;  %v696_v7 = vpop.f32.mrb[46].mxu0  ;;  %1621 = vmatprep.mubr.msk.bf16.mxu1 %vm492_vm0, %v826_v2 }
 0x168   : > { %v697_v8 = vadd.f32 %v696_v7, %v2076_v29  ;;  %v698_v9 = vpop.f32.mrb[47].mxu0  ;;  %1186 = vmatmul.mubr.bf16.gmra.mrb[40].mxu1 %v825_v1  ;;  %v785_v11 = vmax.f32 %v693_v4, 0.0 }
 0x169   : > { %v699_v10 = vadd.f32 %v698_v9, %v2080_v30  ;;  %v786_v13 = vmax.f32 %v695_v6, 0.0 }
 0x16a   : > { %v787_v12 = vmax.f32 %v697_v8, 0.0 }
 0x16b   : > { %v788_v14 = vmax.f32 %v699_v10, 0.0 }
 0x16c   : > { %v827_v15 = vpack.c.bf16 %v787_v12, %v785_v11 }
 0x16d   : > { %v828_v16 = vpack.c.bf16 %v788_v14, %v786_v13  ;;  %v702_v17 = vpop.f32.mrb[48].mxu0  ;;  %v862_v14 = vld [vmem:[%s2351_s4] sm:$0x3] }
 0x16e   : > { %v703_v18 = vadd.f32 %v702_v17, %v2076_v29  ;;  %v704_v19 = vpop.f32.mrb[49].mxu0 }
 0x16f   : > { %v705_v20 = vadd.f32 %v704_v19, %v2080_v30  ;;  %v706_v21 = vpop.f32.mrb[50].mxu0  ;;  %1622 = vmatprep.mubr.msk.bf16.mxu1 %vm492_vm0, %v828_v16 }
 0x170   : > { %v707_v22 = vadd.f32 %v706_v21, %v2076_v29  ;;  %v708_v23 = vpop.f32.mrb[51].mxu0  ;;  %1196 = vmatmul.mubr.bf16.gmra.mrb[44].mxu1 %v827_v15  ;;  %v789_v27 = vmax.f32 %v703_v18, 0.0 }
 0x171   : > { %v709_v24 = vadd.f32 %v708_v23, %v2080_v30  ;;  %v790_v32 = vmax.f32 %v705_v20, 0.0 }
 0x172   : > { %v791_v31 = vmax.f32 %v707_v22, 0.0 }
 0x173   : > { %v792_v33 = vmax.f32 %v709_v24, 0.0 }
 0x174   : > { %v829_v34 = vpack.c.bf16 %v791_v31, %v789_v27 }
 0x175   : > { %v830_v35 = vpack.c.bf16 %v792_v33, %v790_v32  ;;  %v712_v36 = vpop.f32.mrb[52].mxu0 }
 0x176   : > { %v713_v37 = vadd.f32 %v712_v36, %v2076_v29  ;;  %v714_v38 = vpop.f32.mrb[53].mxu0 }
 0x177   : > { %v715_v39 = vadd.f32 %v714_v38, %v2080_v30  ;;  %v716_v40 = vpop.f32.mrb[54].mxu0  ;;  %1623 = vmatprep.mubr.msk.bf16.mxu1 %vm492_vm0, %v830_v35 }
 0x178   : > { %v717_v41 = vadd.f32 %v716_v40, %v2076_v29  ;;  %v718_v42 = vpop.f32.mrb[55].mxu0  ;;  %1206 = vmatmul.mubr.bf16.gmra.mrb[48].mxu1 %v829_v34  ;;  %v793_v44 = vmax.f32 %v713_v37, 0.0 }
 0x179   : > { %v719_v43 = vadd.f32 %v718_v42, %v2080_v30  ;;  %v794_v46 = vmax.f32 %v715_v39, 0.0 }
 0x17a   : > { %v795_v45 = vmax.f32 %v717_v41, 0.0 }
 0x17b   : > { %v796_v47 = vmax.f32 %v719_v43, 0.0 }
 0x17c   : > { %v831_v48 = vpack.c.bf16 %v795_v45, %v793_v44 }
 0x17d   : > { %v832_v49 = vpack.c.bf16 %v796_v47, %v794_v46  ;;  %v722_v50 = vpop.f32.mrb[56].mxu0 }
 0x17e   : > { %v723_v51 = vadd.f32 %v722_v50, %v2076_v29  ;;  %v724_v52 = vpop.f32.mrb[57].mxu0 }
 0x17f   : > { %v725_v53 = vadd.f32 %v724_v52, %v2080_v30  ;;  %v726_v54 = vpop.f32.mrb[58].mxu0  ;;  %1624 = vmatprep.mubr.msk.bf16.mxu1 %vm492_vm0, %v832_v49 }
 0x180   : > { %v727_v55 = vadd.f32 %v726_v54, %v2076_v29  ;;  %v728_v56 = vpop.f32.mrb[59].mxu0  ;;  %1216 = vmatmul.mubr.bf16.gmra.mrb[52].mxu1 %v831_v48  ;;  %v797_v58 = vmax.f32 %v723_v51, 0.0 }
 0x181   : > { %v729_v57 = vadd.f32 %v728_v56, %v2080_v30  ;;  %v798_v60 = vmax.f32 %v725_v53, 0.0 }
 0x182   : > { %v799_v59 = vmax.f32 %v727_v55, 0.0 }
 0x183   : > { %v800_v61 = vmax.f32 %v729_v57, 0.0 }
 0x184   : > { %v833_v62 = vpack.c.bf16 %v799_v59, %v797_v58 }
 0x185   : > { %v834_v63 = vpack.c.bf16 %v800_v61, %v798_v60  ;;  %v732_v0 = vpop.f32.mrb[60].mxu0 }
 0x186   : > { %v733_v1 = vadd.f32 %v732_v0, %v2076_v29  ;;  %v734_v2 = vpop.f32.mrb[61].mxu0 }
 0x187   : > { %v735_v3 = vadd.f32 %v734_v2, %v2080_v30  ;;  %v736_v4 = vpop.f32.mrb[62].mxu0  ;;  %1625 = vmatprep.mubr.msk.bf16.mxu1 %vm492_vm0, %v834_v63 }
 0x188   : > { %v737_v5 = vadd.f32 %v736_v4, %v2076_v29  ;;  %v738_v6 = vpop.f32.mrb[63].mxu0  ;;  %1226 = vmatmul.mubr.bf16.gmra.mrb[56].mxu1 %v833_v62  ;;  %v801_v8 = vmax.f32 %v733_v1, 0.0  ;;  %v2167_v29 = vrot.slane %v862_v14, %v359_v26 }
 0x189   : > { %v739_v7 = vadd.f32 %v738_v6, %v2080_v30  ;;  %v802_v10 = vmax.f32 %v735_v3, 0.0  ;;  %v2171_v30 = vrot.slane %v862_v14, %v363_v28 }
 0x18a   : > { %v803_v9 = vmax.f32 %v737_v5, 0.0 }
 0x18b   : > { %v804_v11 = vmax.f32 %v739_v7, 0.0 }
 0x18c   : > { %v835_v12 = vpack.c.bf16 %v803_v9, %v801_v8 }
 0x18d   : > { %v836_v13 = vpack.c.bf16 %v804_v11, %v802_v10 }
 0x18f   : > { %1626 = vmatprep.mubr.msk.bf16.mxu1 %vm492_vm0, %v836_v13 }
 0x190   : > { %1236 = vmatmul.mubr.bf16.gmra.mrb[60].mxu1 %v835_v12 }
 0x1eb   : > { %v1087_v15 = vpop.f32.mrb[0].mxu1 }
 0x1ec   : > { %v1088_v16 = vadd.f32 %v1087_v15, %v2167_v29  ;;  %v1089_v17 = vpop.f32.mrb[1].mxu1 }
 0x1ed   : > { %v1090_v18 = vadd.f32 %v1089_v17, %v2171_v30  ;;  %v1091_v19 = vpop.f32.mrb[2].mxu1 }
 0x1ee   : > { %v1092_v25 = vadd.f32 %v1091_v19, %v2167_v29  ;;  %v1093_v26 = vpop.f32.mrb[3].mxu1 }
 0x1ef   : > { %v1663_v28 = vpack.c.bf16 %v1090_v18, %v1088_v16  ;;  %v1094_v21 = vadd.f32 %v1093_v26, %v2171_v30 }
 0x1f1   : > { %1440 = vst.msk [vmem:[%s2184_s19] sm:$0xff] %vm2177_vm3, %v1663_v28  ;;  %v1664_v22 = vpack.c.bf16 %v1094_v21, %v1092_v25 }
 0x1f3   : > { %1441 = vst.msk [vmem:[%s2184_s19 + $0x8] sm:$0xff] %vm2177_vm3, %v1664_v22  ;;  %v1097_v23 = vpop.f32.mrb[4].mxu1 }
 0x1f4   : > { %v1098_v24 = vadd.f32 %v1097_v23, %v2167_v29  ;;  %v1099_v27 = vpop.f32.mrb[5].mxu1 }
 0x1f5   : > { %v1100_v31 = vadd.f32 %v1099_v27, %v2171_v30  ;;  %v1101_v32 = vpop.f32.mrb[6].mxu1 }
 0x1f6   : > { %v1102_v33 = vadd.f32 %v1101_v32, %v2167_v29  ;;  %v1103_v34 = vpop.f32.mrb[7].mxu1 }
 0x1f7   : > { %v1665_v35 = vpack.c.bf16 %v1100_v31, %v1098_v24  ;;  %v1104_v36 = vadd.f32 %v1103_v34, %v2171_v30 }
 0x1f9   : > { %1442 = vst.msk [vmem:[%s2184_s19 + $0x10] sm:$0xff] %vm2177_vm3, %v1665_v35  ;;  %v1666_v37 = vpack.c.bf16 %v1104_v36, %v1102_v33 }
 0x1fb   : > { %1443 = vst.msk [vmem:[%s2184_s19 + $0x18] sm:$0xff] %vm2177_vm3, %v1666_v37  ;;  %v1107_v38 = vpop.f32.mrb[8].mxu1 }
 0x1fc   : > { %v1108_v39 = vadd.f32 %v1107_v38, %v2167_v29  ;;  %v1109_v40 = vpop.f32.mrb[9].mxu1 }
 0x1fd   : > { %v1110_v41 = vadd.f32 %v1109_v40, %v2171_v30  ;;  %v1111_v42 = vpop.f32.mrb[10].mxu1 }
 0x1fe   : > { %v1112_v43 = vadd.f32 %v1111_v42, %v2167_v29  ;;  %v1113_v44 = vpop.f32.mrb[11].mxu1 }
 0x1ff   : > { %v1667_v45 = vpack.c.bf16 %v1110_v41, %v1108_v39  ;;  %v1114_v46 = vadd.f32 %v1113_v44, %v2171_v30 }
 0x201   : > { %1444 = vst.msk [vmem:[%s2184_s19 + $0x20] sm:$0xff] %vm2177_vm3, %v1667_v45  ;;  %v1668_v47 = vpack.c.bf16 %v1114_v46, %v1112_v43 }
 0x203   : > { %1445 = vst.msk [vmem:[%s2184_s19 + $0x28] sm:$0xff] %vm2177_vm3, %v1668_v47  ;;  %v1117_v48 = vpop.f32.mrb[12].mxu1 }
 0x204   : > { %v1118_v49 = vadd.f32 %v1117_v48, %v2167_v29  ;;  %v1119_v50 = vpop.f32.mrb[13].mxu1 }
 0x205   : > { %v1120_v51 = vadd.f32 %v1119_v50, %v2171_v30  ;;  %v1121_v52 = vpop.f32.mrb[14].mxu1 }
 0x206   : > { %v1122_v53 = vadd.f32 %v1121_v52, %v2167_v29  ;;  %v1123_v54 = vpop.f32.mrb[15].mxu1 }
 0x207   : > { %v1669_v55 = vpack.c.bf16 %v1120_v51, %v1118_v49  ;;  %v1124_v56 = vadd.f32 %v1123_v54, %v2171_v30 }
 0x209   : > { %1446 = vst.msk [vmem:[%s2184_s19 + $0x30] sm:$0xff] %vm2177_vm3, %v1669_v55  ;;  %v1670_v57 = vpack.c.bf16 %v1124_v56, %v1122_v53 }
 0x20b   : > { %1447 = vst.msk [vmem:[%s2184_s19 + $0x38] sm:$0xff] %vm2177_vm3, %v1670_v57  ;;  %v1127_v58 = vpop.f32.mrb[16].mxu1 }
 0x20c   : > { %v1128_v59 = vadd.f32 %v1127_v58, %v2167_v29  ;;  %v1129_v60 = vpop.f32.mrb[17].mxu1 }
 0x20d   : > { %v1130_v61 = vadd.f32 %v1129_v60, %v2171_v30  ;;  %v1131_v62 = vpop.f32.mrb[18].mxu1 }
 0x20e   : > { %v1132_v63 = vadd.f32 %v1131_v62, %v2167_v29  ;;  %v1133_v0 = vpop.f32.mrb[19].mxu1 }
 0x20f   : > { %v1671_v1 = vpack.c.bf16 %v1130_v61, %v1128_v59  ;;  %v1134_v2 = vadd.f32 %v1133_v0, %v2171_v30 }
 0x211   : > { %1448 = vst.msk [vmem:[%s2184_s19 + $0x40] sm:$0xff] %vm2177_vm3, %v1671_v1  ;;  %v1672_v3 = vpack.c.bf16 %v1134_v2, %v1132_v63 }
 0x213   : > { %1449 = vst.msk [vmem:[%s2184_s19 + $0x48] sm:$0xff] %vm2177_vm3, %v1672_v3  ;;  %v1137_v4 = vpop.f32.mrb[20].mxu1 }
 0x214   : > { %v1138_v5 = vadd.f32 %v1137_v4, %v2167_v29  ;;  %v1139_v6 = vpop.f32.mrb[21].mxu1 }
 0x215   : > { %v1140_v7 = vadd.f32 %v1139_v6, %v2171_v30  ;;  %v1141_v8 = vpop.f32.mrb[22].mxu1 }
 0x216   : > { %v1142_v9 = vadd.f32 %v1141_v8, %v2167_v29  ;;  %v1143_v10 = vpop.f32.mrb[23].mxu1 }
 0x217   : > { %v1673_v11 = vpack.c.bf16 %v1140_v7, %v1138_v5  ;;  %v1144_v12 = vadd.f32 %v1143_v10, %v2171_v30 }
 0x219   : > { %1450 = vst.msk [vmem:[%s2184_s19 + $0x50] sm:$0xff] %vm2177_vm3, %v1673_v11  ;;  %v1674_v13 = vpack.c.bf16 %v1144_v12, %v1142_v9 }
 0x21b   : > { %1451 = vst.msk [vmem:[%s2184_s19 + $0x58] sm:$0xff] %vm2177_vm3, %v1674_v13  ;;  %v1147_v14 = vpop.f32.mrb[24].mxu1 }
 0x21c   : > { %v1148_v15 = vadd.f32 %v1147_v14, %v2167_v29  ;;  %v1149_v16 = vpop.f32.mrb[25].mxu1 }
 0x21d   : > { %v1150_v17 = vadd.f32 %v1149_v16, %v2171_v30  ;;  %v1151_v18 = vpop.f32.mrb[26].mxu1 }
 0x21e   : > { %v1152_v19 = vadd.f32 %v1151_v18, %v2167_v29  ;;  %v1153_v25 = vpop.f32.mrb[27].mxu1 }
 0x21f   : > { %v1675_v26 = vpack.c.bf16 %v1150_v17, %v1148_v15  ;;  %v1154_v28 = vadd.f32 %v1153_v25, %v2171_v30 }
 0x221   : > { %1452 = vst.msk [vmem:[%s2184_s19 + $0x60] sm:$0xff] %vm2177_vm3, %v1675_v26  ;;  %v1676_v21 = vpack.c.bf16 %v1154_v28, %v1152_v19 }
 0x223   : > { %1453 = vst.msk [vmem:[%s2184_s19 + $0x68] sm:$0xff] %vm2177_vm3, %v1676_v21  ;;  %v1157_v22 = vpop.f32.mrb[28].mxu1 }
 0x224   : > { %v1158_v23 = vadd.f32 %v1157_v22, %v2167_v29  ;;  %v1159_v24 = vpop.f32.mrb[29].mxu1 }
 0x225   : > { %v1160_v27 = vadd.f32 %v1159_v24, %v2171_v30  ;;  %v1161_v31 = vpop.f32.mrb[30].mxu1 }
 0x226   : > { %v1162_v32 = vadd.f32 %v1161_v31, %v2167_v29  ;;  %v1163_v33 = vpop.f32.mrb[31].mxu1 }
 0x227   : > { %v1677_v34 = vpack.c.bf16 %v1160_v27, %v1158_v23  ;;  %v1164_v35 = vadd.f32 %v1163_v33, %v2171_v30 }
 0x229   : > { %1454 = vst.msk [vmem:[%s2184_s19 + $0x70] sm:$0xff] %vm2177_vm3, %v1677_v34  ;;  %v1678_v36 = vpack.c.bf16 %v1164_v35, %v1162_v32 }
 0x22b   : > { %1455 = vst.msk [vmem:[%s2184_s19 + $0x78] sm:$0xff] %vm2177_vm3, %v1678_v36  ;;  %v1167_v37 = vpop.f32.mrb[32].mxu1 }
 0x22c   : > { %v1168_v38 = vadd.f32 %v1167_v37, %v2167_v29  ;;  %v1169_v39 = vpop.f32.mrb[33].mxu1 }
 0x22d   : > { %v1170_v40 = vadd.f32 %v1169_v39, %v2171_v30  ;;  %v1171_v41 = vpop.f32.mrb[34].mxu1 }
 0x22e   : > { %v1172_v42 = vadd.f32 %v1171_v41, %v2167_v29  ;;  %v1173_v43 = vpop.f32.mrb[35].mxu1 }
 0x22f   : > { %v1679_v44 = vpack.c.bf16 %v1170_v40, %v1168_v38  ;;  %v1174_v45 = vadd.f32 %v1173_v43, %v2171_v30 }
 0x231   : > { %1456 = vst.msk [vmem:[%s2184_s19 + $0x80] sm:$0xff] %vm2177_vm3, %v1679_v44  ;;  %v1680_v46 = vpack.c.bf16 %v1174_v45, %v1172_v42 }
 0x233   : > { %1457 = vst.msk [vmem:[%s2184_s19 + $0x88] sm:$0xff] %vm2177_vm3, %v1680_v46  ;;  %v1177_v47 = vpop.f32.mrb[36].mxu1 }
 0x234   : > { %v1178_v48 = vadd.f32 %v1177_v47, %v2167_v29  ;;  %v1179_v49 = vpop.f32.mrb[37].mxu1 }
 0x235   : > { %v1180_v50 = vadd.f32 %v1179_v49, %v2171_v30  ;;  %v1181_v51 = vpop.f32.mrb[38].mxu1 }
 0x236   : > { %v1182_v52 = vadd.f32 %v1181_v51, %v2167_v29  ;;  %v1183_v53 = vpop.f32.mrb[39].mxu1 }
 0x237   : > { %v1681_v54 = vpack.c.bf16 %v1180_v50, %v1178_v48  ;;  %v1184_v55 = vadd.f32 %v1183_v53, %v2171_v30 }
 0x239   : > { %1458 = vst.msk [vmem:[%s2184_s19 + $0x90] sm:$0xff] %vm2177_vm3, %v1681_v54  ;;  %v1682_v56 = vpack.c.bf16 %v1184_v55, %v1182_v52 }
 0x23b   : > { %1459 = vst.msk [vmem:[%s2184_s19 + $0x98] sm:$0xff] %vm2177_vm3, %v1682_v56  ;;  %v1187_v57 = vpop.f32.mrb[40].mxu1 }
 0x23c   : > { %v1188_v58 = vadd.f32 %v1187_v57, %v2167_v29  ;;  %v1189_v59 = vpop.f32.mrb[41].mxu1 }
 0x23d   : > { %v1190_v60 = vadd.f32 %v1189_v59, %v2171_v30  ;;  %v1191_v61 = vpop.f32.mrb[42].mxu1 }
 0x23e   : > { %v1192_v62 = vadd.f32 %v1191_v61, %v2167_v29  ;;  %v1193_v63 = vpop.f32.mrb[43].mxu1 }
 0x23f   : > { %v1683_v0 = vpack.c.bf16 %v1190_v60, %v1188_v58  ;;  %v1194_v1 = vadd.f32 %v1193_v63, %v2171_v30 }
 0x241   : > { %1460 = vst.msk [vmem:[%s2184_s19 + $0xa0] sm:$0xff] %vm2177_vm3, %v1683_v0  ;;  %v1684_v2 = vpack.c.bf16 %v1194_v1, %v1192_v62 }
 0x243   : > { %1461 = vst.msk [vmem:[%s2184_s19 + $0xa8] sm:$0xff] %vm2177_vm3, %v1684_v2  ;;  %v1197_v3 = vpop.f32.mrb[44].mxu1 }
 0x244   : > { %v1198_v4 = vadd.f32 %v1197_v3, %v2167_v29  ;;  %v1199_v5 = vpop.f32.mrb[45].mxu1 }
 0x245   : > { %v1200_v6 = vadd.f32 %v1199_v5, %v2171_v30  ;;  %v1201_v7 = vpop.f32.mrb[46].mxu1 }
 0x246   : > { %v1202_v8 = vadd.f32 %v1201_v7, %v2167_v29  ;;  %v1203_v9 = vpop.f32.mrb[47].mxu1 }
 0x247   : > { %v1685_v10 = vpack.c.bf16 %v1200_v6, %v1198_v4  ;;  %v1204_v11 = vadd.f32 %v1203_v9, %v2171_v30 }
 0x249   : > { %1462 = vst.msk [vmem:[%s2184_s19 + $0xb0] sm:$0xff] %vm2177_vm3, %v1685_v10  ;;  %v1686_v12 = vpack.c.bf16 %v1204_v11, %v1202_v8 }
 0x24b   : > { %1463 = vst.msk [vmem:[%s2184_s19 + $0xb8] sm:$0xff] %vm2177_vm3, %v1686_v12  ;;  %v1207_v13 = vpop.f32.mrb[48].mxu1 }
 0x24c   : > { %v1208_v14 = vadd.f32 %v1207_v13, %v2167_v29  ;;  %v1209_v15 = vpop.f32.mrb[49].mxu1 }
 0x24d   : > { %v1210_v16 = vadd.f32 %v1209_v15, %v2171_v30  ;;  %v1211_v17 = vpop.f32.mrb[50].mxu1 }
 0x24e   : > { %v1212_v18 = vadd.f32 %v1211_v17, %v2167_v29  ;;  %v1213_v19 = vpop.f32.mrb[51].mxu1 }
 0x24f   : > { %v1687_v25 = vpack.c.bf16 %v1210_v16, %v1208_v14  ;;  %v1214_v26 = vadd.f32 %v1213_v19, %v2171_v30 }
 0x251   : > { %1464 = vst.msk [vmem:[%s2184_s19 + $0xc0] sm:$0xff] %vm2177_vm3, %v1687_v25  ;;  %v1688_v28 = vpack.c.bf16 %v1214_v26, %v1212_v18 }
 0x253   : > { %1465 = vst.msk [vmem:[%s2184_s19 + $0xc8] sm:$0xff] %vm2177_vm3, %v1688_v28  ;;  %v1217_v21 = vpop.f32.mrb[52].mxu1 }
 0x254   : > { %v1218_v22 = vadd.f32 %v1217_v21, %v2167_v29  ;;  %v1219_v23 = vpop.f32.mrb[53].mxu1 }
 0x255   : > { %v1220_v24 = vadd.f32 %v1219_v23, %v2171_v30  ;;  %v1221_v27 = vpop.f32.mrb[54].mxu1 }
 0x256   : > { %v1222_v31 = vadd.f32 %v1221_v27, %v2167_v29  ;;  %v1223_v32 = vpop.f32.mrb[55].mxu1 }
 0x257   : > { %v1689_v33 = vpack.c.bf16 %v1220_v24, %v1218_v22  ;;  %v1224_v34 = vadd.f32 %v1223_v32, %v2171_v30 }
 0x259   : > { %1466 = vst.msk [vmem:[%s2184_s19 + $0xd0] sm:$0xff] %vm2177_vm3, %v1689_v33  ;;  %v1690_v35 = vpack.c.bf16 %v1224_v34, %v1222_v31 }
 0x25b   : > { %1467 = vst.msk [vmem:[%s2184_s19 + $0xd8] sm:$0xff] %vm2177_vm3, %v1690_v35  ;;  %v1227_v36 = vpop.f32.mrb[56].mxu1 }
 0x25c   : > { %v1228_v37 = vadd.f32 %v1227_v36, %v2167_v29  ;;  %v1229_v38 = vpop.f32.mrb[57].mxu1 }
 0x25d   : > { %v1230_v39 = vadd.f32 %v1229_v38, %v2171_v30  ;;  %v1231_v40 = vpop.f32.mrb[58].mxu1 }
 0x25e   : > { %v1232_v41 = vadd.f32 %v1231_v40, %v2167_v29  ;;  %v1233_v42 = vpop.f32.mrb[59].mxu1 }
 0x25f   : > { %v1691_v43 = vpack.c.bf16 %v1230_v39, %v1228_v37  ;;  %v1234_v44 = vadd.f32 %v1233_v42, %v2171_v30 }
 0x261   : > { %1468 = vst.msk [vmem:[%s2184_s19 + $0xe0] sm:$0xff] %vm2177_vm3, %v1691_v43  ;;  %v1692_v45 = vpack.c.bf16 %v1234_v44, %v1232_v41 }
 0x263   : > { %1469 = vst.msk [vmem:[%s2184_s19 + $0xe8] sm:$0xff] %vm2177_vm3, %v1692_v45  ;;  %v1237_v46 = vpop.f32.mrb[60].mxu1 }
 0x264   : > { %v1238_v47 = vadd.f32 %v1237_v46, %v2167_v29  ;;  %v1239_v48 = vpop.f32.mrb[61].mxu1 }
 0x265   : > { %v1240_v49 = vadd.f32 %v1239_v48, %v2171_v30  ;;  %v1241_v50 = vpop.f32.mrb[62].mxu1 }
 0x266   : > { %v1242_v51 = vadd.f32 %v1241_v50, %v2167_v29  ;;  %v1243_v52 = vpop.f32.mrb[63].mxu1 }
 0x267   : > { %v1693_v53 = vpack.c.bf16 %v1240_v49, %v1238_v47  ;;  %v1244_v54 = vadd.f32 %v1243_v52, %v2171_v30 }
 0x269   : > { %1470 = vst.msk [vmem:[%s2184_s19 + $0xf0] sm:$0xff] %vm2177_vm3, %v1693_v53  ;;  %v1694_v55 = vpack.c.bf16 %v1244_v54, %v1242_v51 }
 0x26b   : > { %1471 = vst.msk [vmem:[%s2184_s19 + $0xf8] sm:$0xff] %vm2177_vm3, %v1694_v55 }
 0x26c PF: > { %s15_s18 = sadd.s32 1, %s1785_s18  }
 0x26d   : > { %p12_p4 = scmp.ge.s32.totalorder %s15_s18, 4  }
 0x26f   :  { %14 = sbr.rel (!%p12_p4) target bundleno = 1 (0x1), region = 70 }

</bundles_post_ra>
